<compile_context>
chip_gen: v7x
topology: tpu7x:2x2x1
jax: 0.10.0
libtpu: 0.0.40
codegen_flags: <defaults>
</compile_context>

<pallas_src>
import math

import jax
import jax.numpy as jnp
from jax.experimental import pallas as pl
from jax.experimental.pallas import tpu as pltpu

_LN_10000 = math.log(10000.0)

_TARGET_BLOCK_BYTES = 2 * 1024 * 1024   # ~1-2 MiB x-blocks -> ~85% of HBM roofline
_MAX_BLOCK_BYTES = 4 * 1024 * 1024      # hard cap so all live buffers fit every gen


def _pe_add_kernel(x_ref, pe_ref, o_ref):
    """x_ref/o_ref: (Bblk, TR, L); pe_ref: (TR, L). Pure streaming add."""
    o_ref[...] = (x_ref[...].astype(jnp.float32)
                  + pe_ref[...].astype(jnp.float32)).astype(o_ref.dtype)


def _pe_table(S, D):
    """(S, D) float32 PE buffer, exactly mirroring the PyTorch construction."""
    position = jnp.arange(S, dtype=jnp.float32)[:, None]                    # (S, 1)
    div_term = jnp.exp(jnp.arange(0, D, 2, dtype=jnp.float32)
                       * (-_LN_10000 / float(D)))                           # (D/2,)
    ang = position * div_term                                               # (S, D/2)
    # interleave sin/cos -> [sin0, cos0, sin1, cos1, ...]
    return jnp.stack([jnp.sin(ang), jnp.cos(ang)], axis=-1).reshape(S, D)


def _choose_row_tile(num_rows, bytes_per_row):
    """Row tile from a byte budget.

    Returns (tile_rows, ragged).  Prefers the largest multiple-of-8 divisor of
    num_rows within the target budget that still leaves >= 2 tiles (v7x 2-TC
    split); falls back to a single full-extent tile for small arrays, and to a
    ragged (cdiv) tiling only when the full extent would blow the VMEM cap.
    """
    budget_rows = max(8, _TARGET_BLOCK_BYTES // max(bytes_per_row, 1))
    cands = [t for t in range(8, num_rows + 1, 8) if num_rows % t == 0]
    good = [t for t in cands if t <= budget_rows and num_rows // t >= 2]
    if good:
        return max(good), False
    good = [t for t in cands if t <= budget_rows]
    if good:
        return max(good), False
    if num_rows * bytes_per_row <= _MAX_BLOCK_BYTES:
        return num_rows, False                       # full extent (always legal)
    return max(8, (budget_rows // 8) * 8), True      # ragged last tile via cdiv


def positional_encoding(x):
    """x: [B, S, D]. Returns x + pe[:S]  (dropout p=0 is the identity)."""
    B, S, D = x.shape
    if D % 2 != 0:
        raise ValueError("d_model must be even (as assumed by the PyTorch reference).")

    # ---- lane-dense packing: flatten (S, D) -> (R, L) with L a multiple of 128
    total = S * D
    if total % 128 == 0:
        L = 128
        R = total // 128
    else:
        # TODO(synk): last dim stays D (masked stores) when S*D is not a multiple of 128.
        L = D
        R = S

    xp = x.reshape(B, R, L)                      # contiguous row-major repack (no-op)
    pe = _pe_table(S, D).reshape(R, L)           # (R, L) float32

    itemsize = jnp.dtype(x.dtype).itemsize
    fold_batch = (B * L * itemsize * 8) <= _MAX_BLOCK_BYTES

    if fold_batch:
        bytes_per_row = B * L * itemsize
        TR, ragged = _choose_row_tile(R, bytes_per_row)
        num_tiles = pl.cdiv(R, TR) if ragged else R // TR
        grid = (num_tiles,)
        in_specs = [pl.BlockSpec((B, TR, L), lambda r: (0, r, 0)),
                    pl.BlockSpec((TR, L), lambda r: (r, 0))]
        out_specs = pl.BlockSpec((B, TR, L), lambda r: (0, r, 0))
        dim_sem = ("parallel",)
    else:
        bytes_per_row = L * itemsize
        TR, ragged = _choose_row_tile(R, bytes_per_row)
        num_tiles = pl.cdiv(R, TR) if ragged else R // TR
        # Row tiles outer ("parallel"), batch innermost ("arbitrary"): the PE
        # block index is constant across b, so it is fetched once per row tile.
        grid = (num_tiles, B)
        in_specs = [pl.BlockSpec((1, TR, L), lambda r, b: (b, r, 0)),
                    pl.BlockSpec((TR, L), lambda r, b: (r, 0))]
        out_specs = pl.BlockSpec((1, TR, L), lambda r, b: (b, r, 0))
        dim_sem = ("parallel", "arbitrary")

    # NOTE: input_output_aliases={0: 0} would enable in-place update when the
    # caller donates x; omitted here to keep the interpret/compile path simple.
    out = pl.pallas_call(
        _pe_add_kernel,
        out_shape=jax.ShapeDtypeStruct((B, R, L), x.dtype),
        grid=grid,
        in_specs=in_specs,
        out_specs=out_specs,
        compiler_params=pltpu.CompilerParams(
            dimension_semantics=dim_sem,
            # x-blocks are capped at <= 4 MiB; with double-buffered in/out + pe
            # the working set stays far below the scoped limit on v5e/v6e/v7x.
            vmem_limit_bytes=32 * 1024 * 1024,
        ),
    )(xp, pe)
    return out.reshape(B, S, D)


def _reference(x):
    # Pure-JAX reference mirroring the PyTorch buffer construction.
    B, S, D = x.shape
    position = jnp.arange(S, dtype=jnp.float32)[:, None]                   # (S, 1)
    div_term = jnp.exp(jnp.arange(0, D, 2, dtype=jnp.float32)
                       * (-_LN_10000 / D))                                 # (D/2,)
    pe = jnp.zeros((S, D), dtype=jnp.float32)
    pe = pe.at[:, 0::2].set(jnp.sin(position * div_term))
    pe = pe.at[:, 1::2].set(jnp.cos(position * div_term))
    return (x.astype(jnp.float32) + pe[None, :, :]).astype(x.dtype)


if __name__ == "__main__":
    key = jax.random.PRNGKey(0)
    B, S, D = 2, 8, 32  # batch, seq, d_model
    x = jax.random.normal(key, (B, S, D), dtype=jnp.float32)

    out = jax.block_until_ready(positional_encoding(x))
    ref = _reference(x)

    assert out.shape == (B, S, D)
    assert jnp.allclose(out, ref, atol=1e-5, rtol=1e-5), "mismatch vs reference"

    print("KERNEL_OK")
</pallas_src>

<mosaic_0001>
module attributes {stable_mosaic.version = 11 : i64} {
  func.func @_pe_add_kernel(%arg0: i32, %arg1: memref<2x2x128xf32, #tpu.memory_space<vmem>>, %arg2: memref<2x128xf32, #tpu.memory_space<vmem>>, %arg3: memref<2x2x128xf32, #tpu.memory_space<vmem>>) attributes {dimension_semantics = [#tpu.dimension_semantics<parallel>], iteration_bounds = array<i64: 1>, scalar_prefetch = 0 : i64, scratch_operands = 0 : i64, tpu.core_type = #tpu.core_type<tc>, window_params = [{transform_indices = @transform_0, window_bounds = array<i64: 2, 2, 128>}, {transform_indices = @transform_1, window_bounds = array<i64: 2, 128>}, {transform_indices = @transform_2, window_bounds = array<i64: 2, 2, 128>}]} {
    %c0 = arith.constant 0 : index
    %c0_0 = arith.constant 0 : index
    %c0_1 = arith.constant 0 : index
    %0 = vector.load %arg1[%c0, %c0_0, %c0_1] : memref<2x2x128xf32, #tpu.memory_space<vmem>>, vector<2x2x128xf32>
    %c0_2 = arith.constant 0 : index
    %c0_3 = arith.constant 0 : index
    %1 = vector.load %arg2[%c0_2, %c0_3] : memref<2x128xf32, #tpu.memory_space<vmem>>, vector<2x128xf32>
    %2 = vector.shape_cast %1 : vector<2x128xf32> to vector<1x2x128xf32>
    %3 = vector.broadcast %2 : vector<1x2x128xf32> to vector<2x2x128xf32>
    %4 = arith.addf %0, %3 : vector<2x2x128xf32>
    %c0_4 = arith.constant 0 : index
    %c0_5 = arith.constant 0 : index
    %c0_6 = arith.constant 0 : index
    %5 = vector.load %arg3[%c0_4, %c0_5, %c0_6] : memref<2x2x128xf32, #tpu.memory_space<vmem>>, vector<2x2x128xf32>
    tpu.vector_store %arg3[%c0_4, %c0_5, %c0_6], %4 {strides = array<i32>} : memref<2x2x128xf32, #tpu.memory_space<vmem>>, vector<2x2x128xf32>,
    return
  }
  func.func @transform_0(%arg0: i32) -> (i32, i32, i32) {
    %c0_i32 = arith.constant 0 : i32
    %c0_i32_0 = arith.constant 0 : i32
    %c0_i32_1 = arith.constant 0 : i32
    return %c0_i32, %arg0, %c0_i32_0 : i32, i32, i32
  }
  func.func @transform_1(%arg0: i32) -> (i32, i32) {
    %c0_i32 = arith.constant 0 : i32
    %c0_i32_0 = arith.constant 0 : i32
    return %arg0, %c0_i32 : i32, i32
  }
  func.func @transform_2(%arg0: i32) -> (i32, i32, i32) {
    %c0_i32 = arith.constant 0 : i32
    %c0_i32_0 = arith.constant 0 : i32
    %c0_i32_1 = arith.constant 0 : i32
    return %c0_i32, %arg0, %c0_i32_0 : i32, i32, i32
  }
}

</mosaic_0001>

<bundles_post_ra>
// kernel: tpu_custom_call.1
= control target key start
LH: loop header
LB: loop body
LE: loop exit
PB: predicated region body
PF: predicated region fallthrough
CT: control target
= control target key end

     0   :  { %7 = vsyncpa [#allocation3], 0  ;;  %s154_s0 = inlined_call_operand.hbm [shape: f32[2,2,128], index: 0, kind: input, shape index: {}]   ;;  %s155_s1 = inlined_call_operand.vmem [shape: f32[2,128], index: 1, kind: input, shape index: {}]   ;;  %s156_s2 = inlined_call_operand.hbm [shape: f32[2,2,128], index: 2, kind: output, shape index: {}]  }
   0x1   :  { %8 = vsyncpa [#allocation4], 0  ;;  %s102_s9 = smov [#allocation2]   ;;  %s54_s13 = scalar_lea.hbm %s154_s0, 64 }
   0x2   :  { %s14_s10 = sshll.u32 %s102_s9, 4  ;;  %p55_p0 = scmp.ne.s32.totalorder %s154_s0, %s54_s13  ;;  %s15_s10 = int_to_ptr.vmem [resolvable:$true] %s14_s10 }
   0x3   :  { %p58_p1 = scmp.lt.u32.totalorder %s54_s13, %s154_s0 }
   0x5   :  { %p60_p2 = pnand %p58_p1, %p55_p0 }
   0x7   :  { %63 = shalt.err (!%p60_p2)
}
   0x8   :  { %s64_s18 = scalar_lea.vmem %s15_s10, 64  ;;  %p69_p4 = scmp.lt.s32.totalorder %s15_s10, %s15_s10 }
   0x9   :  { %p65_p3 = scmp.ne.s32.totalorder %s15_s10, %s64_s18  ;;  %p70_p5 = scmp.lt.s32.totalorder %s64_s18, %s64_s18 }
   0xb   :  { %p71_p6 = por %p70_p5, %p69_p4 }
   0xd   :  { %p72_p7 = pnand %p71_p6, %p65_p3 }
   0xf   :  { %75 = shalt.err (!%p72_p7)
}
  0x10   :  { %s103_s19 = smov 32   ;;  %s104_s20 = smov 2  }
  0x11   :  { %20 = dma.hbm_to_vmem [thread:$0]  %s154_s0, 64, %s15_s10, [#allocation3], %s103_s19, %s103_s19, %s104_s20  }
  0x12   :  { %98 = dma.done.wait [#allocation3], 64  }
  0x13   :  { %99 = vsyncadd [#allocation3], 4294967232  ;;  %s105_s23 = smov [#allocation5]   ;;  %v26_v0 = vld [vmem:[#allocation2] sm:$0x3] }
  0x14   :  { %s38_s24 = sshll.u32 %s105_s23, 4  ;;  %v28_v1 = vld [vmem:[%s155_s1] sm:$0x3]  ;;  %v27_v2 = vld [vmem:[#allocation2 + $0x2] sm:$0x3]  ;;  %s39_s24 = int_to_ptr.vmem [resolvable:$true] %s38_s24 }
  0x15   :  { %v29_v3 = vadd.f32 %v28_v1, %v26_v0  ;;  %v30_v4 = vadd.f32 %v28_v1, %v27_v2  ;;  %s76_s27 = scalar_lea.vmem %s39_s24, 64  ;;  %p81_p9 = scmp.lt.s32.totalorder %s39_s24, %s39_s24 }
  0x16   :  { %p77_p8 = scmp.ne.s32.totalorder %s39_s24, %s76_s27  ;;  %p82_p10 = scmp.lt.s32.totalorder %s76_s27, %s76_s27 }
  0x17   :  { %31 = vst [vmem:[#allocation5] sm:$0x3] %v29_v3  ;;  %32 = vst [vmem:[#allocation5 + $0x2] sm:$0x3] %v30_v4 }
  0x18   :  { %p83_p11 = por %p82_p10, %p81_p9 }
  0x1a   :  { %p84_p12 = pnand %p83_p11, %p77_p8 }
  0x1c   :  { %87 = shalt.err (!%p84_p12)
}
  0x1d   :  { %s88_s29 = scalar_lea.hbm %s156_s2, 64 }
  0x1e   :  { %p89_p13 = scmp.ne.s32.totalorder %s156_s2, %s88_s29  ;;  %p92_p0 = scmp.lt.u32.totalorder %s88_s29, %s156_s2 }
  0x20   :  { %p94_p1 = pnand %p92_p0, %p89_p13 }
  0x22   :  { %97 = shalt.err (!%p94_p1)
}
  0x23   :  { %44 = dma.vmem_to_hbm [thread:$0]  %s39_s24, 64, %s156_s2, [#allocation4], %s103_s19, %s103_s19, %s104_s20  }
  0x24   :  { %100 = dma.done.wait [#allocation4], 64  }
  0x25   :  { %101 = vsyncadd [#allocation4], 4294967232 }
  0x26   :  { %48 = vsyncpa [#allocation3], 1 }
  0x27   :  { %49 = vsyncpa [#allocation4], 1 }

</bundles_post_ra>
